<compile_context>
chip_gen: v7x
topology: tpu7x:2x2x1
jax: 0.10.0
libtpu: 0.0.40
codegen_flags: <defaults>
</compile_context>

<pallas_src>
import math

import jax
import jax.numpy as jnp
from jax.experimental import pallas as pl
from jax.experimental.pallas import tpu as pltpu


_MIB = 1024 * 1024


def _copy_kernel(x_ref, o_ref):
    # Identity copy of the current lane-dense block.
    o_ref[...] = x_ref[...]


def _resolve_shape(shape, total):
    """Resolve a torch-style view shape (supports a single -1)."""
    if isinstance(shape, int):
        shape = (shape,)
    shape = tuple(int(s) for s in shape)
    if shape.count(-1) > 1:
        raise ValueError("only one dimension may be -1")
    if -1 in shape:
        known = 1
        for s in shape:
            if s != -1:
                known *= s
        if known == 0 or total % known != 0:
            raise ValueError(f"cannot view {total} elements as {shape}")
        shape = tuple(total // known if s == -1 else s for s in shape)
    if math.prod(shape) != total:
        raise ValueError(f"cannot view {total} elements as {shape}")
    return shape


def _sublane_multiple(dtype):
    # Packed sublane granularity: 8 rows for 4-byte, 16 for 2-byte, 32 for 1-byte.
    itemsize = jnp.dtype(dtype).itemsize
    return {4: 8, 2: 16, 1: 32}.get(itemsize, 8)


def _vmem_plan():
    """(vmem_limit_bytes, target_block_bytes) tuned per TPU generation."""
    vmem_phys = 128 * _MIB
    try:
        info = pltpu.get_tpu_info()
        cap = int(getattr(info, "vmem_capacity_bytes", 0) or 0)
        if cap > 0:
            vmem_phys = cap
    except Exception:
        pass  # interpret mode / unknown chip: assume the 128 MiB generations.
    if vmem_phys >= 128 * _MIB:
        # v5e / v6e: 8 MiB blocks -> 2 in + 2 out buffers = 32 MiB of 64 MiB limit.
        return 64 * _MIB, 8 * _MIB
    # v7x: only 64 MiB physical per TC; 4 MiB blocks -> 16 MiB of a 40 MiB limit.
    return 40 * _MIB, 4 * _MIB


def _pick_lanes(total):
    # Widest lane-dense slab width that divides the element count exactly.
    for lanes in (2048, 1024, 512, 256, 128):
        if total % lanes == 0:
            return lanes
    return None


def _pick_ragged_cols(total, max_cols=8192, min_cols=128, min_rows=8):
    """Widest divisor of `total` usable as a full-extent last block dim."""
    upper = min(max_cols, total // min_rows)
    for cols in range(upper, min_cols - 1, -1):
        if total % cols == 0:
            return cols
    return None


def _copy_2d(x2d):
    """Streaming identity copy of a (rows, lanes) slab with large blocks."""
    rows, lanes = x2d.shape
    itemsize = jnp.dtype(x2d.dtype).itemsize
    sub = _sublane_multiple(x2d.dtype)
    vmem_limit, block_bytes = _vmem_plan()

    target_rows = max(sub, (block_bytes // (lanes * itemsize)) // sub * sub)
    if rows <= target_rows:
        block_rows = rows  # full-extent block: always a legal tile
    else:
        # Bounded exact-divisor search: accept a divisor only if it keeps the
        # block >= half the target; otherwise keep the big block and let the
        # last grid step be a masked partial block (safe for a pure copy).
        block_rows = target_rows
        lo = max(sub, (target_rows // 2) // sub * sub)
        for cand in range(target_rows, lo - 1, -sub):
            if rows % cand == 0:
                block_rows = cand
                break

    grid = (pl.cdiv(rows, block_rows),)

    return pl.pallas_call(
        _copy_kernel,
        out_shape=jax.ShapeDtypeStruct((rows, lanes), x2d.dtype),
        grid_spec=pltpu.PrefetchScalarGridSpec(
            num_scalar_prefetch=0,
            grid=grid,
            in_specs=[pl.BlockSpec((block_rows, lanes), lambda i: (i, 0))],
            out_specs=pl.BlockSpec((block_rows, lanes), lambda i: (i, 0)),
        ),
        compiler_params=pltpu.CompilerParams(
            dimension_semantics=("parallel",),   # lets v7x shard over its 2 TCs
            vmem_limit_bytes=vmem_limit,
        ),
        cost_estimate=pl.CostEstimate(
            flops=0,
            transcendentals=0,
            bytes_accessed=2 * rows * lanes * itemsize,
        ),
    )(x2d)


def reshape_pallas(x, shape, *, materialize=True, donate=False):
    """Equivalent of torch.Tensor.view(shape) for contiguous inputs.

    materialize=False (or donate=True) is the zero-copy metadata-only path,
    which is what torch .view actually does; materialize=True runs the Pallas
    streaming-copy kernel.
    """
    total = x.size
    out_shape = _resolve_shape(shape, total)

    if not materialize or donate or total == 0:
        # Zero-copy fast path: a contiguous view needs no HBM traffic at all.
        # (When the caller donates the buffer, skipping the kernel beats any
        # tuned aliased copy, which would still read+write every byte.)
        return jnp.reshape(x, out_shape)

    flat = x.reshape(-1)                 # row-major contiguous-view semantics
    itemsize = jnp.dtype(x.dtype).itemsize
    sub = _sublane_multiple(x.dtype)
    _, block_bytes = _vmem_plan()

    # Aligned fast path: lane-dense slab, zero extra HBM passes.
    lanes = _pick_lanes(total)
    if lanes is not None:
        out2d = _copy_2d(flat.reshape(-1, lanes))
        return out2d.reshape(out_shape)  # metadata-only glue

    # Ragged (total % 128 != 0) without pad/slice passes:
    # (a) small slab -> single full-extent (1, total) block (waives (8,128));
    #     `sub` accounts for the sublane padding of a 1-row slab in VMEM.
    if total * itemsize * sub <= block_bytes:
        out2d = _copy_2d(flat.reshape(1, total))
        return out2d.reshape(out_shape)

    # (b) larger slab -> factor as (rows, cols); cols equals the full last
    #     dim so the block is legal even though cols % 128 != 0.
    cols = _pick_ragged_cols(total)
    if cols is not None:
        out2d = _copy_2d(flat.reshape(-1, cols))
        return out2d.reshape(out_shape)

    # (c) pathological (huge near-prime element count): padded fallback.
    # TODO(synk): replace with aligned-prefix kernel + masked tail store to
    # drop the extra pad + slice HBM passes in this rare case.
    lanes = 128
    padded_total = pl.cdiv(total, lanes) * lanes
    flat = jnp.pad(flat, (0, padded_total - total))
    out2d = _copy_2d(flat.reshape(-1, lanes))
    return out2d.reshape(-1)[:total].reshape(out_shape)


if __name__ == "__main__":
    key = jax.random.PRNGKey(0)

    # FedSage-style usage: (B, C, H, W) -> (B, C*H*W), exercising -1 resolution.
    x = jax.random.normal(key, (2, 4, 16, 16), dtype=jnp.float32)
    target_shape = (2, -1)

    y = jax.block_until_ready(reshape_pallas(x, target_shape, materialize=True))
    ref = jnp.reshape(x, (2, 4 * 16 * 16))
    assert y.shape == ref.shape and y.dtype == ref.dtype
    assert bool(jnp.array_equal(y, ref))

    # Zero-copy (metadata-only) path -- semantically identical to torch .view.
    y_view = jax.block_until_ready(reshape_pallas(x, target_shape, materialize=False))
    assert bool(jnp.array_equal(y_view, ref))

    # donate=True short-circuits to the view path (no redundant HBM copy).
    y_don = jax.block_until_ready(reshape_pallas(x, target_shape, donate=True))
    assert bool(jnp.array_equal(y_don, ref))

    # Ragged-size path (total % 128 != 0) -- single full-extent block, no pad.
    x2 = jax.random.normal(jax.random.PRNGKey(0), (3, 5, 7), dtype=jnp.float32)
    y2 = jax.block_until_ready(reshape_pallas(x2, (5, 21), materialize=True))
    assert bool(jnp.array_equal(y2, jnp.reshape(x2, (5, 21))))

    # bf16 input exercising the 16-row sublane granularity.
    x3 = jax.random.normal(jax.random.PRNGKey(0), (4, 8, 32), dtype=jnp.bfloat16)
    y3 = jax.block_until_ready(reshape_pallas(x3, (-1, 64), materialize=True))
    assert bool(jnp.array_equal(y3, jnp.reshape(x3, (16, 64))))

    print("KERNEL_OK")
</pallas_src>

<mosaic_0001>
module attributes {stable_mosaic.version = 11 : i64} {
  func.func @_copy_kernel(%arg0: i32, %arg1: memref<1x2048xf32, #tpu.memory_space<vmem>>, %arg2: memref<1x2048xf32, #tpu.memory_space<vmem>>) attributes {dimension_semantics = [#tpu.dimension_semantics<parallel>], iteration_bounds = array<i64: 1>, scalar_prefetch = 0 : i64, scratch_operands = 0 : i64, tpu.core_type = #tpu.core_type<tc>, window_params = [{transform_indices = @transform_0, window_bounds = array<i64: 1, 2048>}, {transform_indices = @transform_1, window_bounds = array<i64: 1, 2048>}]} {
    %c0 = arith.constant 0 : index
    %c0_0 = arith.constant 0 : index
    %0 = vector.load %arg1[%c0, %c0_0] : memref<1x2048xf32, #tpu.memory_space<vmem>>, vector<1x2048xf32>
    %c0_1 = arith.constant 0 : index
    %c0_2 = arith.constant 0 : index
    %1 = vector.load %arg2[%c0_1, %c0_2] : memref<1x2048xf32, #tpu.memory_space<vmem>>, vector<1x2048xf32>
    tpu.vector_store %arg2[%c0_1, %c0_2], %0 {strides = array<i32>} : memref<1x2048xf32, #tpu.memory_space<vmem>>, vector<1x2048xf32>,
    return
  }
  func.func @transform_0(%arg0: i32) -> (i32, i32) {
    %c0_i32 = arith.constant 0 : i32
    %c0_i32_0 = arith.constant 0 : i32
    return %arg0, %c0_i32 : i32, i32
  }
  func.func @transform_1(%arg0: i32) -> (i32, i32) {
    %c0_i32 = arith.constant 0 : i32
    %c0_i32_0 = arith.constant 0 : i32
    return %arg0, %c0_i32 : i32, i32
  }
}

</mosaic_0001>

<bundles_post_ra>
// kernel: tpu_custom_call.1
= control target key start
LH: loop header
LB: loop body
LE: loop exit
PB: predicated region body
PF: predicated region fallthrough
CT: control target
= control target key end

     0   :  { %6 = vsyncpa [#allocation3], 0  ;;  %s126_s0 = inlined_call_operand.hbm [shape: f32[1,2048], index: 0, kind: input, shape index: {}]   ;;  %s127_s1 = inlined_call_operand.hbm [shape: f32[1,2048], index: 1, kind: output, shape index: {}]  }
   0x1   :  { %7 = vsyncpa [#allocation4], 0  ;;  %s90_s6 = smov [#allocation2]   ;;  %s42_s10 = scalar_lea.hbm %s126_s0, 256 }
   0x2   :  { %s14_s7 = sshll.u32 %s90_s6, 4  ;;  %p43_p0 = scmp.ne.s32.totalorder %s126_s0, %s42_s10  ;;  %s15_s7 = int_to_ptr.vmem [resolvable:$true] %s14_s7 }
   0x3   :  { %p46_p1 = scmp.lt.u32.totalorder %s42_s10, %s126_s0 }
   0x5   :  { %p48_p2 = pnand %p46_p1, %p43_p0 }
   0x7   :  { %51 = shalt.err (!%p48_p2)
}
   0x8   :  { %s52_s15 = scalar_lea.vmem %s15_s7, 256  ;;  %p57_p4 = scmp.lt.s32.totalorder %s15_s7, %s15_s7 }
   0x9   :  { %p53_p3 = scmp.ne.s32.totalorder %s15_s7, %s52_s15  ;;  %p58_p5 = scmp.lt.s32.totalorder %s52_s15, %s52_s15 }
   0xb   :  { %p59_p6 = por %p58_p5, %p57_p4 }
   0xd   :  { %p60_p7 = pnand %p59_p6, %p53_p3 }
   0xf   :  { %63 = shalt.err (!%p60_p7)
}
  0x10   :  { %17 = dma.hbm_to_vmem [thread:$0]  %s126_s0, 256, %s15_s7, [#allocation3]  }
  0x11   :  { %86 = dma.done.wait [#allocation3], 256  }
  0x12   :  { %87 = vsyncadd [#allocation3], 4294967040  ;;  %s91_s18 = smov [#allocation5]   ;;  %v21_v0 = vld [vmem:[#allocation2] sm:$0xff]  ;;  %v22_v1 = vld [vmem:[#allocation2 + $0x8] sm:$0xff] }
  0x13   :  { %s31_s19 = sshll.u32 %s91_s18, 4  ;;  %23 = vst [vmem:[#allocation5] sm:$0xff] %v21_v0  ;;  %24 = vst [vmem:[#allocation5 + $0x8] sm:$0xff] %v22_v1  ;;  %s32_s19 = int_to_ptr.vmem [resolvable:$true] %s31_s19 }
  0x14   :  { %s64_s20 = scalar_lea.vmem %s32_s19, 256  ;;  %p69_p9 = scmp.lt.s32.totalorder %s32_s19, %s32_s19 }
  0x15   :  { %p65_p8 = scmp.ne.s32.totalorder %s32_s19, %s64_s20  ;;  %p70_p10 = scmp.lt.s32.totalorder %s64_s20, %s64_s20 }
  0x17   :  { %p71_p11 = por %p70_p10, %p69_p9 }
  0x19   :  { %p72_p12 = pnand %p71_p11, %p65_p8 }
  0x1b   :  { %75 = shalt.err (!%p72_p12)
}
  0x1c   :  { %s76_s0 = scalar_lea.hbm %s127_s1, 256 }
  0x1d   :  { %p77_p13 = scmp.ne.s32.totalorder %s127_s1, %s76_s0  ;;  %p80_p0 = scmp.lt.u32.totalorder %s76_s0, %s127_s1 }
  0x1f   :  { %p82_p1 = pnand %p80_p0, %p77_p13 }
  0x21   :  { %85 = shalt.err (!%p82_p1)
}
  0x22   :  { %34 = dma.vmem_to_hbm [thread:$0]  %s32_s19, 256, %s127_s1, [#allocation4]  }
  0x23   :  { %88 = dma.done.wait [#allocation4], 256  }
  0x24   :  { %89 = vsyncadd [#allocation4], 4294967040 }
  0x25   :  { %38 = vsyncpa [#allocation3], 1 }
  0x26   :  { %39 = vsyncpa [#allocation4], 1 }

</bundles_post_ra>
